<compile_context>
chip_gen: v7x
topology: tpu7x:2x2x1
jax: 0.10.0
libtpu: 0.0.40
codegen_flags: <defaults>
</compile_context>

<pallas_src>
import functools

import jax
import jax.numpy as jnp
from jax import lax
from jax.experimental import pallas as pl
from jax.experimental.pallas import tpu as pltpu


def _round_up(x, m):
    return (x + m - 1) // m * m


# ---------------------------------------------------------------------------
# In-kernel helpers
# ---------------------------------------------------------------------------
def _finalize_softmax(out_ref, i, actual_len):
    """On the last L-tile: masked softmax over the resident (TILE_B, L_pad) score slab."""
    @pl.when(i == pl.num_programs(1) - 1)
    def _():
        s = out_ref[...]                                           # (TILE_B, L_pad) f32
        col = lax.broadcasted_iota(jnp.int32, s.shape, 1)
        s = jnp.where(col < actual_len, s, -jnp.inf)               # mask L padding
        m = jnp.max(s, axis=-1, keepdims=True)
        e = jnp.exp(s - m)
        # Exact division (NOT approx reciprocal): rows sum to 1 to f32 precision.
        out_ref[...] = e / jnp.sum(e, axis=-1, keepdims=True)


# ---------------------------------------------------------------------------
# Kernels.  Grid = (num_B_tiles, num_L_tiles); per step the kernel sees:
#   hw_ref / hp_ref : (TILE_B, H)        folded hidden rows for this batch tile
#   w2t_ref         : (H, H)             pre-transposed concat weight (enc half)
#   v_ref           : (1, H) bf16        concat v parameter
#   enc_ref         : (TILE_L, TILE_B, H) one contiguous slab of encoder_outputs
#   out_ref         : (TILE_B, L_pad)    resident score slab -> softmax'd in place
# ---------------------------------------------------------------------------
def _dot_general_kernel(hw_ref, enc_ref, out_ref, *, actual_len, tile_l, tile_b):
    i = pl.program_id(1)
    start = pl.multiple_of(i * tile_l, tile_l)
    for b in range(tile_b):                                        # static unroll, TILE_B <= 8
        row = lax.dot_general(                                     # (1, TILE_L) on the MXU
            hw_ref[pl.ds(b, 1), :], enc_ref[:, b, :],
            dimension_numbers=(((1,), (1,)), ((), ())),
            preferred_element_type=jnp.float32)
        out_ref[pl.ds(b, 1), pl.ds(start, tile_l)] = row
    _finalize_softmax(out_ref, i, actual_len)


def _concat_kernel(hp_ref, w2t_ref, v_ref, enc_ref, out_ref, *, actual_len, tile_l, tile_b):
    i = pl.program_id(1)
    start = pl.multiple_of(i * tile_l, tile_l)
    w2t = w2t_ref[...]                                             # hoisted out of the b-loop
    v_b = v_ref[...]                                               # (1, H) bf16
    for b in range(tile_b):
        encb = enc_ref[:, b, :]                                    # (TILE_L, H)
        e_proj = jnp.dot(encb, w2t,                                # (TILE_L, H) MXU
                         preferred_element_type=jnp.float32)
        energy = jnp.tanh(e_proj + hp_ref[pl.ds(b, 1), :])         # bias folded into hp; EUP
        row = lax.dot_general(                                     # v . energy on the MXU (bf16)
            v_b, energy.astype(v_b.dtype),
            dimension_numbers=(((1,), (1,)), ((), ())),
            preferred_element_type=jnp.float32)                    # (1, TILE_L)
        out_ref[pl.ds(b, 1), pl.ds(start, tile_l)] = row
    _finalize_softmax(out_ref, i, actual_len)


# ---------------------------------------------------------------------------
# Wrapper (mirrors Attn.forward).  hidden: (1,B,H), encoder_outputs: (L,B,H).
# Returns (B,1,L) float32 attention weights.
# ---------------------------------------------------------------------------
def attn_forward(method, hidden, encoder_outputs, w=None, b=None, v=None, tile_l=None):
    L, B, H = encoder_outputs.shape
    dtype = encoder_outputs.dtype
    itemsize = encoder_outputs.dtype.itemsize
    h2 = hidden.reshape(B, H)

    # Batch tile: whole batch when small (block == full dim), else 8 (sublane-dense).
    tile_b = B if B <= 8 else 8
    n_bt = pl.cdiv(B, tile_b)

    # Adaptive L tile: one tile for short/medium L, capped by a ~4 MiB/buffer enc budget.
    if tile_l is None:
        row_bytes = max(tile_b * H * itemsize, 1)
        cap = max(128, ((4 << 20) // row_bytes) // 128 * 128)
        tile_l = int(min(_round_up(L, 128), cap, 2048))
    tile_l = max(128, _round_up(int(tile_l), 128))
    n_lt = pl.cdiv(L, tile_l)
    l_pad = n_lt * tile_l

    grid = (n_bt, n_lt)
    enc_spec = pl.BlockSpec((tile_l, tile_b, H), lambda bb, i: (i, bb, 0))
    hw_spec = pl.BlockSpec((tile_b, H), lambda bb, i: (bb, 0))
    out_spec = pl.BlockSpec((tile_b, l_pad), lambda bb, i: (bb, 0))
    whh_spec = pl.BlockSpec((H, H), lambda bb, i: (0, 0))
    v_spec = pl.BlockSpec((1, H), lambda bb, i: (0, 0))
    out_shape = jax.ShapeDtypeStruct((B, l_pad), jnp.float32)

    # VMEM budget sized from the real buffers (double-buffered) + headroom.
    vmem_bytes = (2 * tile_l * tile_b * H * itemsize        # enc tile (pipelined)
                  + 2 * tile_b * l_pad * 4                  # resident score slab
                  + 2 * H * H * itemsize + 2 * H * 4        # concat weight / v
                  + 2 * tile_b * H * 4                      # folded hidden rows
                  + (16 << 20))                             # headroom
    cparams = pltpu.CompilerParams(
        dimension_semantics=("parallel", "arbitrary"),       # batch tiles across cores; L last
        vmem_limit_bytes=int(min(max(vmem_bytes, 32 << 20), 100 << 20)))

    if method in ('dot', 'general'):
        if method == 'dot':
            hw = h2.astype(dtype)
        else:
            # Fold the Linear into hidden: hidden.(enc@W.T + b) == (hidden@W).enc + hidden.b
            # The hidden.b term is constant per batch row -> softmax-invariant -> dropped.
            hw = (h2.astype(jnp.float32) @ w.astype(jnp.float32)).astype(dtype)
        kernel = functools.partial(_dot_general_kernel, actual_len=L,
                                   tile_l=tile_l, tile_b=tile_b)
        out = pl.pallas_call(
            kernel,
            grid=grid,
            in_specs=[hw_spec, enc_spec],
            out_specs=out_spec,
            out_shape=out_shape,
            compiler_params=cparams,
        )(hw, encoder_outputs)

    elif method == 'concat':
        # cat(hidden, enc) @ Wc.T == hidden @ W1.T + enc @ W2.T,  Wc = [W1 | W2]
        w32 = w.astype(jnp.float32)
        hp = h2.astype(jnp.float32) @ w32[:, :H].T + b.astype(jnp.float32)   # (B, H) f32
        w2t = w[:, H:].T.astype(dtype)                    # pre-transposed for the MXU
        v2 = v.reshape(1, H).astype(jnp.bfloat16)         # bf16 feed for the final dot
        kernel = functools.partial(_concat_kernel, actual_len=L,
                                   tile_l=tile_l, tile_b=tile_b)
        out = pl.pallas_call(
            kernel,
            grid=grid,
            in_specs=[hw_spec, whh_spec, v_spec, enc_spec],
            out_specs=out_spec,
            out_shape=out_shape,
            compiler_params=cparams,
        )(hp, w2t, v2, encoder_outputs)

    else:
        raise ValueError(method, "is not an appropriate attention method.")

    return out[:, None, :L]                               # (B, 1, L), strip lane padding


# ---------------------------------------------------------------------------
# Pure-JAX reference (f32) for correctness checks
# ---------------------------------------------------------------------------
def attn_reference(method, hidden, encoder_outputs, w=None, b=None, v=None):
    hidden = hidden.astype(jnp.float32)
    enc = encoder_outputs.astype(jnp.float32)
    if method == 'dot':
        scores = jnp.sum(hidden * enc, axis=2)
    elif method == 'general':
        energy = enc @ w.astype(jnp.float32).T + b.astype(jnp.float32)
        scores = jnp.sum(hidden * energy, axis=2)
    elif method == 'concat':
        h_exp = jnp.broadcast_to(hidden, enc.shape)
        cat = jnp.concatenate([h_exp, enc], axis=2)
        energy = jnp.tanh(cat @ w.astype(jnp.float32).T + b.astype(jnp.float32))
        scores = jnp.sum(v.astype(jnp.float32) * energy, axis=2)
    sm = jax.nn.softmax(scores.T, axis=1)                  # (B, L)
    return sm[:, None, :]                                  # (B, 1, L)


# ---------------------------------------------------------------------------
# Self-test
# ---------------------------------------------------------------------------
if __name__ == "__main__":
    def run_case(L, B, H, dtype, tol, methods, tile_l=None):
        key = jax.random.PRNGKey(0)
        ks = jax.random.split(key, 7)
        hidden = jax.random.normal(ks[0], (1, B, H), jnp.float32).astype(dtype)
        enc = jax.random.normal(ks[1], (L, B, H), jnp.float32).astype(dtype)

        w_g = 0.1 * jax.random.normal(ks[2], (H, H), jnp.float32)        # Linear(H,H).weight
        b_g = 0.1 * jax.random.normal(ks[3], (H,), jnp.float32)          # Linear(H,H).bias
        w_c = 0.1 * jax.random.normal(ks[4], (H, 2 * H), jnp.float32)    # Linear(2H,H).weight
        b_c = 0.1 * jax.random.normal(ks[5], (H,), jnp.float32)          # Linear(2H,H).bias
        v_p = 0.1 * jax.random.normal(ks[6], (H,), jnp.float32)          # Parameter(H)

        all_params = {
            'dot': {},
            'general': dict(w=w_g, b=b_g),
            'concat': dict(w=w_c, b=b_c, v=v_p),
        }
        for method in methods:
            params = all_params[method]
            out = jax.block_until_ready(
                attn_forward(method, hidden, enc, tile_l=tile_l, **params))
            ref = attn_reference(method, hidden, enc, **params)
            assert out.shape == (B, 1, L), (method, out.shape)
            assert bool(jnp.all(jnp.isfinite(out))), method
            # attention weights sum to 1 over the sequence axis (exact divide in-kernel)
            assert bool(jnp.allclose(jnp.sum(out, axis=2), 1.0, atol=1e-3)), method
            assert bool(jnp.allclose(out, ref, atol=tol, rtol=tol)), (
                method, float(jnp.max(jnp.abs(out - ref))))

    # small case (single L tile, whole batch in one block), all three score methods
    run_case(L=8, B=2, H=32, dtype=jnp.float32, tol=5e-3,
             methods=('dot', 'general', 'concat'))
    # ragged L (300 valid of a 384-wide tile), single tile
    run_case(L=300, B=4, H=128, dtype=jnp.float32, tol=5e-3,
             methods=('general', 'concat'))
    # forced multi-L-tile path (tile_l=128): exercises the resident score slab + masking
    run_case(L=300, B=4, H=128, dtype=jnp.float32, tol=5e-3,
             methods=('dot', 'general', 'concat'), tile_l=128)
    # multiple batch tiles (TILE_B=8, 2 tiles) on the parallel grid axis
    run_case(L=40, B=16, H=64, dtype=jnp.float32, tol=5e-3,
             methods=('dot', 'general'))
    # bf16 inputs flow straight into the kernel (no wrapper upcast)
    run_case(L=8, B=2, H=32, dtype=jnp.bfloat16, tol=1e-2,
             methods=('dot',))

    print("KERNEL_OK")
</pallas_src>

<mosaic_0001>
module attributes {stable_mosaic.version = 11 : i64} {
  func.func @_dot_general_kernel(%arg0: i32, %arg1: i32, %arg2: memref<2x32xf32, #tpu.memory_space<vmem>>, %arg3: memref<128x2x32xf32, #tpu.memory_space<vmem>>, %arg4: memref<2x128xf32, #tpu.memory_space<vmem>>) attributes {dimension_semantics = [#tpu.dimension_semantics<parallel>, #tpu.dimension_semantics<arbitrary>], iteration_bounds = array<i64: 1, 1>, scalar_prefetch = 0 : i64, scratch_operands = 0 : i64, tpu.core_type = #tpu.core_type<tc>, window_params = [{transform_indices = @transform_0, window_bounds = array<i64: 2, 32>}, {transform_indices = @transform_1, window_bounds = array<i64: 128, 2, 32>}, {transform_indices = @transform_2, window_bounds = array<i64: 2, 128>}]} {
    %c128_i32 = arith.constant 128 : i32
    %0 = arith.muli %arg1, %c128_i32 : i32
    %1 = tpu.assume_multiple %0, 128 : i32
    %c0 = arith.constant 0 : index
    %c0_0 = arith.constant 0 : index
    %2 = vector.load %arg2[%c0, %c0_0] : memref<2x32xf32, #tpu.memory_space<vmem>>, vector<1x32xf32>
    %c0_1 = arith.constant 0 : index
    %c0_2 = arith.constant 0 : index
    %c0_3 = arith.constant 0 : index
    %3 = vector.load %arg3[%c0_1, %c0_2, %c0_3] : memref<128x2x32xf32, #tpu.memory_space<vmem>>, vector<128x1x32xf32>
    %4 = vector.shape_cast %3 : vector<128x1x32xf32> to vector<128x32xf32>
    %cst = arith.constant dense<0.000000e+00> : vector<1x128xf32>
    %5 = tpu.matmul %2, %4, %cst {dimension_numbers = #tpu.dot_dimension_numbers<[1], [1], [0], [0], [0, 0, 1, 0], [], []>} : vector<1x32xf32>, vector<128x32xf32>, vector<1x128xf32> -> vector<1x128xf32>
    %c0_4 = arith.constant 0 : index
    %6 = arith.index_cast %1 : i32 to index
    %7 = vector.load %arg4[%c0_4, %6] : memref<2x128xf32, #tpu.memory_space<vmem>>, vector<1x128xf32>
    tpu.vector_store %arg4[%c0_4, %6], %5 {strides = array<i32>} : memref<2x128xf32, #tpu.memory_space<vmem>>, vector<1x128xf32>,
    %c1 = arith.constant 1 : index
    %c0_5 = arith.constant 0 : index
    %8 = vector.load %arg2[%c1, %c0_5] : memref<2x32xf32, #tpu.memory_space<vmem>>, vector<1x32xf32>
    %c0_6 = arith.constant 0 : index
    %c1_7 = arith.constant 1 : index
    %c0_8 = arith.constant 0 : index
    %9 = vector.load %arg3[%c0_6, %c1_7, %c0_8] : memref<128x2x32xf32, #tpu.memory_space<vmem>>, vector<128x1x32xf32>
    %10 = vector.shape_cast %9 : vector<128x1x32xf32> to vector<128x32xf32>
    %cst_9 = arith.constant dense<0.000000e+00> : vector<1x128xf32>
    %11 = tpu.matmul %8, %10, %cst_9 {dimension_numbers = #tpu.dot_dimension_numbers<[1], [1], [0], [0], [0, 0, 1, 0], [], []>} : vector<1x32xf32>, vector<128x32xf32>, vector<1x128xf32> -> vector<1x128xf32>
    %c1_10 = arith.constant 1 : index
    %12 = arith.index_cast %1 : i32 to index
    %13 = vector.load %arg4[%c1_10, %12] : memref<2x128xf32, #tpu.memory_space<vmem>>, vector<1x128xf32>
    tpu.vector_store %arg4[%c1_10, %12], %11 {strides = array<i32>} : memref<2x128xf32, #tpu.memory_space<vmem>>, vector<1x128xf32>,
    %c0_i32 = arith.constant 0 : i32
    %14 = arith.cmpi eq, %arg1, %c0_i32 : i32
    %15 = arith.extui %14 : i1 to i32
    %c0_i32_11 = arith.constant 0 : i32
    %16 = arith.cmpi ne, %15, %c0_i32_11 : i32
    scf.if %16 {
      %c0_12 = arith.constant 0 : index
      %c0_13 = arith.constant 0 : index
      %17 = vector.load %arg4[%c0_12, %c0_13] : memref<2x128xf32, #tpu.memory_space<vmem>>, vector<2x128xf32>
      %18 = tpu.iota {dimensions = array<i32: 1>} : vector<2x128xi32>
      %c8_i32 = arith.constant 8 : i32
      %19 = vector.broadcast %c8_i32 : i32 to vector<2x128xi32>
      %20 = arith.cmpi slt, %18, %19 : vector<2x128xi32>
      %cst_14 = arith.constant 0xFF800000 : f32
      %21 = vector.broadcast %cst_14 : f32 to vector<2x128xf32>
      %22 = arith.select %20, %17, %21 : vector<2x128xi1>, vector<2x128xf32>
      %cst_15 = arith.constant dense<0xFF800000> : vector<2xf32>
      %23 = vector.multi_reduction <maximumf>, %22, %cst_15 [1] : vector<2x128xf32> to vector<2xf32>
      %24 = vector.shape_cast %23 : vector<2xf32> to vector<2x1xf32>
      %25 = vector.broadcast %24 : vector<2x1xf32> to vector<2x128xf32>
      %26 = arith.subf %22, %25 : vector<2x128xf32>
      %27 = math.exp %26 : vector<2x128xf32>
      %cst_16 = arith.constant dense<0.000000e+00> : vector<2xf32>
      %28 = vector.multi_reduction <add>, %27, %cst_16 [1] : vector<2x128xf32> to vector<2xf32>
      %29 = vector.shape_cast %28 : vector<2xf32> to vector<2x1xf32>
      %30 = vector.broadcast %29 : vector<2x1xf32> to vector<2x128xf32>
      %31 = arith.divf %27, %30 : vector<2x128xf32>
      %c0_17 = arith.constant 0 : index
      %c0_18 = arith.constant 0 : index
      %32 = vector.load %arg4[%c0_17, %c0_18] : memref<2x128xf32, #tpu.memory_space<vmem>>, vector<2x128xf32>
      tpu.vector_store %arg4[%c0_17, %c0_18], %31 {strides = array<i32>} : memref<2x128xf32, #tpu.memory_space<vmem>>, vector<2x128xf32>,
    } else {
    }
    return
  }
  func.func @transform_0(%arg0: i32, %arg1: i32) -> (i32, i32) {
    %c0_i32 = arith.constant 0 : i32
    %c0_i32_0 = arith.constant 0 : i32
    return %arg0, %c0_i32 : i32, i32
  }
  func.func @transform_1(%arg0: i32, %arg1: i32) -> (i32, i32, i32) {
    %c0_i32 = arith.constant 0 : i32
    %c0_i32_0 = arith.constant 0 : i32
    return %arg1, %arg0, %c0_i32 : i32, i32, i32
  }
  func.func @transform_2(%arg0: i32, %arg1: i32) -> (i32, i32) {
    %c0_i32 = arith.constant 0 : i32
    %c0_i32_0 = arith.constant 0 : i32
    return %arg0, %c0_i32 : i32, i32
  }
}

</mosaic_0001>

<bundles_post_ra>
// kernel: tpu_custom_call.1
= control target key start
LH: loop header
LB: loop body
LE: loop exit
PB: predicated region body
PF: predicated region fallthrough
CT: control target
= control target key end

     0   :  { %7 = vsyncpa [#allocation3], 0  ;;  %s1888_s0 = inlined_call_operand.hbm [shape: f32[2,32], index: 0, kind: input, shape index: {}]   ;;  %s1889_s1 = inlined_call_operand.hbm [shape: f32[8,2,32], index: 1, kind: input, shape index: {}]   ;;  %s1890_s2 = inlined_call_operand.hbm [shape: f32[2,128], index: 2, kind: output, shape index: {}]  }
   0x1   :  { %8 = vsyncpa [#allocation6], 0 }
   0x2   :  { %9 = vsyncpa [#allocation4], 0  ;;  %s1549_s9 = smov [#allocation2]   ;;  %s1477_s13 = scalar_lea.hbm %s1888_s0, 32 }
   0x3   :  { %s16_s10 = sshll.u32 %s1549_s9, 4  ;;  %p1478_p0 = scmp.ne.s32.totalorder %s1888_s0, %s1477_s13  ;;  %s17_s10 = int_to_ptr.vmem [resolvable:$true] %s16_s10 }
   0x4   :  { %p1481_p1 = scmp.lt.u32.totalorder %s1477_s13, %s1888_s0 }
   0x6   :  { %p1483_p2 = pnand %p1481_p1, %p1478_p0 }
   0x8   :  { %1486 = shalt.err (!%p1483_p2)
}
   0x9   :  { %s1487_s18 = scalar_lea.vmem %s17_s10, 32  ;;  %p1492_p4 = scmp.lt.s32.totalorder %s17_s10, %s17_s10 }
   0xa   :  { %p1488_p3 = scmp.ne.s32.totalorder %s17_s10, %s1487_s18  ;;  %p1493_p5 = scmp.lt.s32.totalorder %s1487_s18, %s1487_s18 }
   0xc   :  { %p1494_p6 = por %p1493_p5, %p1492_p4 }
   0xe   :  { %p1495_p7 = pnand %p1494_p6, %p1488_p3 }
  0x10   :  { %1498 = shalt.err (!%p1495_p7)
}
  0x11   :  { %19 = dma.hbm_to_vmem [thread:$0]  %s1888_s0, 32, %s17_s10, [#allocation3]  }
  0x12   :  { %24 = vsyncadd [#allocation6], 3840  ;;  %s1550_s21 = smov [#allocation5]   ;;  %s1499_s25 = scalar_lea.hbm %s1889_s1, 256 }
  0x13   :  { %s25_s22 = sshll.u32 %s1550_s21, 4  ;;  %p1500_p8 = scmp.ne.s32.totalorder %s1889_s1, %s1499_s25  ;;  %s26_s22 = int_to_ptr.vmem [resolvable:$true] %s25_s22 }
  0x14   :  { %p1503_p9 = scmp.lt.u32.totalorder %s1499_s25, %s1889_s1 }
  0x16   :  { %p1505_p10 = pnand %p1503_p9, %p1500_p8 }
  0x18   :  { %1508 = shalt.err (!%p1505_p10)
}
  0x19   :  { %s1509_s30 = scalar_lea.vmem %s26_s22, 256  ;;  %s1513_s0 = scalar_lea.vmem %s26_s22, 4096 }
  0x1a   :  { %p1510_p11 = scmp.ne.s32.totalorder %s26_s22, %s1509_s30  ;;  %p1514_p12 = scmp.lt.s32.totalorder %s26_s22, %s26_s22 }
  0x1b   :  { %p1515_p13 = scmp.lt.s32.totalorder %s1513_s0, %s1509_s30 }
  0x1d   :  { %p1516_p0 = por %p1515_p13, %p1514_p12 }
  0x1f   :  { %p1517_p1 = pnand %p1516_p0, %p1510_p11 }
  0x21   :  { %1520 = shalt.err (!%p1517_p1)
}
  0x22   :  { %s1551_s3 = smov 32   ;;  %s1552_s4 = smov 2  }
  0x23   :  { %31 = dma.hbm_to_vmem [thread:$0]  %s1889_s1, 256, %s26_s22, [#allocation6], %s1551_s3, %s1551_s3, %s1552_s4  }
  0x24   :  { %1543 = dma.done.wait [#allocation3], 32  }
  0x25   :  { %1544 = vsyncadd [#allocation3], 4294967264 }
  0x26   :  { %1545 = dma.done.wait [#allocation6], 4096  }
  0x27   :  { %1546 = vsyncadd [#allocation6], 4294963200  ;;  %v1553_v0 = vmov 0.0|0.0   ;;  %vm297_vm0 = vcmask 1041409   ;;  %vm300_vm1 = vcmask 1042434   ;;  %vm303_vm2 = vcmask 1043459  }
  0x28   :  { %1401 = vmatprep.subr.bf16.mxu0 %v1553_v0  ;;  %1433 = vmatprep.subr.bf16.mxu1 %v1553_v0  ;;  %vm306_vm3 = vcmask 1044484   ;;  %vm309_vm4 = vcmask 1045509   ;;  %v41_v1 = vld [vmem:[#allocation5 + $0x2] sm:$0x1]  ;;  %v42_v2 = vld [vmem:[#allocation5 + $0x4] sm:$0x1] }
  0x29   :  { %v43_v3 = vld [vmem:[#allocation5 + $0x6] sm:$0x1]  ;;  %vm312_vm5 = vcmask 1046534   ;;  %v40_v4 = vld [vmem:[#allocation5] sm:$0x1]  ;;  %v296_v16 = vrot.slane %v41_v1, 7 }
  0x2a   :  { %v44_v5 = vld [vmem:[#allocation5 + $0x8] sm:$0x1]  ;;  %v45_v6 = vld [vmem:[#allocation5 + $0xa] sm:$0x1]  ;;  %v46_v7 = vld [vmem:[#allocation5 + $0xc] sm:$0x1] }
  0x2b   :  { %v47_v8 = vld [vmem:[#allocation5 + $0xe] sm:$0x1]  ;;  %v48_v9 = vld [vmem:[#allocation5 + $0x10] sm:$0x1]  ;;  %v49_v10 = vld [vmem:[#allocation5 + $0x12] sm:$0x1]  ;;  %v298_v24 = vsel %vm297_vm0, %v296_v16, %v40_v4 }
  0x2c   :  { %v50_v11 = vld [vmem:[#allocation5 + $0x14] sm:$0x1]  ;;  %v51_v12 = vld [vmem:[#allocation5 + $0x16] sm:$0x1]  ;;  %v52_v13 = vld [vmem:[#allocation5 + $0x18] sm:$0x1] }
  0x2d   :  { %v53_v14 = vld [vmem:[#allocation5 + $0x1a] sm:$0x1]  ;;  %v54_v15 = vld [vmem:[#allocation5 + $0x1c] sm:$0x1]  ;;  %v299_v17 = vrot.slane %v42_v2, 6  ;;  %v302_v18 = vrot.slane %v43_v3, 5 }
  0x2e   :  { %vm315_vm6 = vcmask 1047559   ;;  %v55_v19 = vld [vmem:[#allocation5 + $0x1e] sm:$0x1]  ;;  %v305_v20 = vrot.slane %v44_v5, 4  ;;  %v308_v21 = vrot.slane %v45_v6, 3  ;;  %v311_v22 = vrot.slane %v46_v7, 2 }
  0x2f   :  { %v317_v23 = vrot.slane %v49_v10, 7  ;;  %v319_v25 = vrot.slane %v50_v11, 6  ;;  %v321_v26 = vrot.slane %v51_v12, 5  ;;  %v323_v27 = vrot.slane %v52_v13, 4  ;;  %v639_v28 = vld [vmem:[#allocation5 + $0x3] sm:$0x1] }
  0x30   :  { %v301_v29 = vsel %vm300_vm1, %v299_v17, %v298_v24  ;;  %v314_v30 = vrot.slane %v47_v8, 1  ;;  %v325_v32 = vrot.slane %v53_v14, 3  ;;  %v327_v35 = vrot.slane %v54_v15, 2  ;;  %v638_v36 = vld [vmem:[#allocation5 + $0x1] sm:$0x1]  ;;  %s1556_s1 = smov [#allocation7]  }
  0x31   :  { %v318_v31 = vsel %vm297_vm0, %v317_v23, %v48_v9  ;;  %v304_v33 = vsel %vm303_vm2, %v302_v18, %v301_v29  ;;  %v640_v37 = vld [vmem:[#allocation5 + $0x5] sm:$0x1]  ;;  %v894_v38 = vrot.slane %v639_v28, 7  ;;  %v329_v41 = vrot.slane %v55_v19, 1  ;;  %v641_v42 = vld [vmem:[#allocation5 + $0x7] sm:$0x1] }
  0x32   :  { %v320_v34 = vsel %vm300_vm1, %v319_v25, %v318_v31  ;;  %v307_v39 = vsel %vm306_vm3, %v305_v20, %v304_v33  ;;  %vm527_vm7 = vcmask 261120   ;;  %v642_v43 = vld [vmem:[#allocation5 + $0x9] sm:$0x1]  ;;  %v643_v46 = vld [vmem:[#allocation5 + $0xb] sm:$0x1]  ;;  %v896_v60 = vrot.slane %v640_v37, 6 }
  0x33   :  { %v322_v40 = vsel %vm303_vm2, %v321_v26, %v320_v34  ;;  %v310_v44 = vsel %vm309_vm4, %v308_v21, %v307_v39  ;;  %v644_v47 = vld [vmem:[#allocation5 + $0xd] sm:$0x1]  ;;  %v645_v48 = vld [vmem:[#allocation5 + $0xf] sm:$0x1]  ;;  %v646_v51 = vld [vmem:[#allocation5 + $0x11] sm:$0x1]  ;;  %v895_v55 = vsel %vm297_vm0, %v894_v38, %v638_v36 }
  0x34   :  { %v324_v45 = vsel %vm306_vm3, %v323_v27, %v322_v40  ;;  %v313_v49 = vsel %vm312_vm5, %v311_v22, %v310_v44  ;;  %v647_v52 = vld [vmem:[#allocation5 + $0x13] sm:$0x1]  ;;  %v648_v53 = vld [vmem:[#allocation5 + $0x15] sm:$0x1]  ;;  %v649_v54 = vld [vmem:[#allocation5 + $0x17] sm:$0x1]  ;;  %v897_v7 = vsel %vm300_vm1, %v896_v60, %v895_v55 }
  0x35   :  { %v326_v50 = vsel %vm309_vm4, %v325_v32, %v324_v45  ;;  %v316_v56 = vsel %vm315_vm6, %v314_v30, %v313_v49  ;;  %v650_v58 = vld [vmem:[#allocation5 + $0x19] sm:$0x1]  ;;  %v651_v59 = vld [vmem:[#allocation5 + $0x1b] sm:$0x1]  ;;  %v898_v61 = vrot.slane %v641_v42, 5  ;;  %vm1615_vm8 = vmpackc.low %vm527_vm7, %vm527_vm7  ;;  %v900_v2 = vrot.slane %v642_v43, 4 }
  0x36   :  { %v328_v57 = vsel %vm312_vm5, %v327_v35, %v326_v50  ;;  %v652_v1 = vld [vmem:[#allocation5 + $0x1d] sm:$0x1]  ;;  %v902_v3 = vrot.slane %v643_v46, 3  ;;  %v904_v4 = vrot.slane %v644_v47, 2  ;;  %v653_v6 = vld [vmem:[#allocation5 + $0x1f] sm:$0x1] }
  0x37   :  { %v330_v62 = vsel %vm315_vm6, %v329_v41, %v328_v57  ;;  %v906_v8 = vrot.slane %v645_v48, 1  ;;  %v908_v9 = vrot.slane %v647_v52, 7  ;;  %v57_v10 = vld [vmem:[#allocation5 + $0x22] sm:$0x1]  ;;  %v899_v11 = vsel %vm303_vm2, %v898_v61, %v897_v7  ;;  %v56_v15 = vld [vmem:[#allocation5 + $0x20] sm:$0x1] }
  0x38   :  { %v1402_v5 = vpack.c.bf16 %v330_v62, %v316_v56  ;;  %v910_v12 = vrot.slane %v648_v53, 6  ;;  %v912_v13 = vrot.slane %v649_v54, 5  ;;  %v914_v14 = vrot.slane %v650_v58, 4  ;;  %v58_v19 = vld [vmem:[#allocation5 + $0x24] sm:$0x1]  ;;  %s1252_s7 = sshll.u32 %s1556_s1, 4  ;;  %s1253_s7 = int_to_ptr.vmem [resolvable:$true] %s1252_s7 }
  0x39   :  { %v901_v16 = vsel %vm306_vm3, %v900_v2, %v899_v11  ;;  %v909_v17 = vsel %vm297_vm0, %v908_v9, %v646_v51  ;;  %v916_v18 = vrot.slane %v651_v59, 3  ;;  %v59_v20 = vld [vmem:[#allocation5 + $0x26] sm:$0x1]  ;;  %v918_v23 = vrot.slane %v652_v1, 2  ;;  %v60_v24 = vld [vmem:[#allocation5 + $0x28] sm:$0x1]  ;;  %p1526_p3 = scmp.lt.s32.totalorder %s1253_s7, %s1253_s7 }
  0x3a   :  { %1404 = vmatpush3.bf16.xpose.msk.msra.mxu0 %vm1615_vm8, %v1402_v5  ;;  %v903_v21 = vsel %vm309_vm4, %v902_v3, %v901_v16  ;;  %v911_v22 = vsel %vm300_vm1, %v910_v12, %v909_v17  ;;  %v61_v25 = vld [vmem:[#allocation5 + $0x2a] sm:$0x1]  ;;  %v331_v26 = vrot.slane %v57_v10, 7  ;;  %v920_v29 = vrot.slane %v653_v6, 1  ;;  %v62_v30 = vld [vmem:[#allocation5 + $0x2c] sm:$0x1] }
  0x3b   :  { %1405 = vmatprep.subr.bf16.mxu0 %v1553_v0  ;;  %v905_v27 = vsel %vm312_vm5, %v904_v4, %v903_v21  ;;  %v913_v28 = vsel %vm303_vm2, %v912_v13, %v911_v22  ;;  %v63_v31 = vld [vmem:[#allocation5 + $0x2e] sm:$0x1]  ;;  %v64_v34 = vld [vmem:[#allocation5 + $0x30] sm:$0x1]  ;;  %v65_v35 = vld [vmem:[#allocation5 + $0x32] sm:$0x1] }
  0x3c   :  { %v907_v32 = vsel %vm315_vm6, %v906_v8, %v905_v27  ;;  %v915_v33 = vsel %vm306_vm3, %v914_v14, %v913_v28  ;;  %v66_v36 = vld [vmem:[#allocation5 + $0x34] sm:$0x1]  ;;  %v67_v37 = vld [vmem:[#allocation5 + $0x36] sm:$0x1]  ;;  %v332_v38 = vsel %vm297_vm0, %v331_v26, %v56_v15  ;;  %v68_v40 = vld [vmem:[#allocation5 + $0x38] sm:$0x1] }
  0x3d   :  { %v917_v39 = vsel %vm309_vm4, %v916_v18, %v915_v33  ;;  %v333_v41 = vrot.slane %v58_v19, 6  ;;  %v335_v42 = vrot.slane %v59_v20, 5  ;;  %v337_v43 = vrot.slane %v60_v24, 4  ;;  %v69_v45 = vld [vmem:[#allocation5 + $0x3a] sm:$0x1]  ;;  %s1521_s8 = scalar_lea.vmem %s1253_s7, 32 }
  0x3e   :  { %v919_v44 = vsel %vm312_vm5, %v918_v23, %v917_v39  ;;  %v339_v46 = vrot.slane %v61_v25, 3  ;;  %v341_v47 = vrot.slane %v62_v30, 2  ;;  %v343_v48 = vrot.slane %v63_v31, 1  ;;  %v70_v50 = vld [vmem:[#allocation5 + $0x3c] sm:$0x1]  ;;  %p1522_p2 = scmp.ne.s32.totalorder %s1253_s7, %s1521_s8  ;;  %p1527_p4 = scmp.lt.s32.totalorder %s1521_s8, %s1521_s8 }
  0x3f   :  { %v921_v49 = vsel %vm315_vm6, %v920_v29, %v919_v44  ;;  %v334_v51 = vsel %vm300_vm1, %v333_v41, %v332_v38  ;;  %v345_v52 = vrot.slane %v65_v35, 7  ;;  %v347_v53 = vrot.slane %v66_v36, 6  ;;  %v655_v54 = vld [vmem:[#allocation5 + $0x23] sm:$0x1]  ;;  %v71_v56 = vld [vmem:[#allocation5 + $0x3e] sm:$0x1] }
  0x40   :  { %v1434_v55 = vpack.c.bf16 %v921_v49, %v907_v32  ;;  %v336_v57 = vsel %vm303_vm2, %v335_v42, %v334_v51  ;;  %v349_v58 = vrot.slane %v67_v37, 5  ;;  %v351_v59 = vrot.slane %v68_v40, 4  ;;  %v654_v60 = vld [vmem:[#allocation5 + $0x21] sm:$0x1]  ;;  %v656_v2 = vld [vmem:[#allocation5 + $0x25] sm:$0x1]  ;;  %p1528_p5 = por %p1527_p4, %p1526_p3 }
  0x41   :  { %v338_v61 = vsel %vm306_vm3, %v337_v43, %v336_v57  ;;  %v346_v62 = vsel %vm297_vm0, %v345_v52, %v64_v34  ;;  %v353_v1 = vrot.slane %v69_v45, 3  ;;  %v657_v3 = vld [vmem:[#allocation5 + $0x27] sm:$0x1]  ;;  %v355_v6 = vrot.slane %v70_v50, 2  ;;  %v658_v7 = vld [vmem:[#allocation5 + $0x29] sm:$0x1] }
  0x42   :  { %1436 = vmatpush3.bf16.xpose.msk.msra.mxu1 %vm1615_vm8, %v1434_v55  ;;  %v340_v4 = vsel %vm309_vm4, %v339_v46, %v338_v61  ;;  %v348_v5 = vsel %vm300_vm1, %v347_v53, %v346_v62  ;;  %v659_v8 = vld [vmem:[#allocation5 + $0x2b] sm:$0x1]  ;;  %v922_v9 = vrot.slane %v655_v54, 7  ;;  %v357_v12 = vrot.slane %v71_v56, 1  ;;  %v660_v13 = vld [vmem:[#allocation5 + $0x2d] sm:$0x1]  ;;  %p1529_p6 = pnand %p1528_p5, %p1522_p2 }
  0x43   :  { %1437 = vmatprep.subr.bf16.mxu1 %v1553_v0  ;;  %v342_v10 = vsel %vm312_vm5, %v341_v47, %v340_v4  ;;  %v350_v11 = vsel %vm303_vm2, %v349_v58, %v348_v5  ;;  %v661_v14 = vld [vmem:[#allocation5 + $0x2f] sm:$0x1]  ;;  %v662_v17 = vld [vmem:[#allocation5 + $0x31] sm:$0x1]  ;;  %v663_v18 = vld [vmem:[#allocation5 + $0x33] sm:$0x1] }
  0x44   :  { %v344_v15 = vsel %vm315_vm6, %v343_v48, %v342_v10  ;;  %v352_v16 = vsel %vm306_vm3, %v351_v59, %v350_v11  ;;  %v664_v19 = vld [vmem:[#allocation5 + $0x35] sm:$0x1]  ;;  %v665_v20 = vld [vmem:[#allocation5 + $0x37] sm:$0x1]  ;;  %v923_v21 = vsel %vm297_vm0, %v922_v9, %v654_v60  ;;  %v666_v23 = vld [vmem:[#allocation5 + $0x39] sm:$0x1] }
  0x45   :  { %v354_v22 = vsel %vm309_vm4, %v353_v1, %v352_v16  ;;  %v924_v24 = vrot.slane %v656_v2, 6  ;;  %v926_v25 = vrot.slane %v657_v3, 5  ;;  %v928_v26 = vrot.slane %v658_v7, 4  ;;  %v667_v28 = vld [vmem:[#allocation5 + $0x3b] sm:$0x1] }
  0x46   :  { %v356_v27 = vsel %vm312_vm5, %v355_v6, %v354_v22  ;;  %v930_v29 = vrot.slane %v659_v8, 3  ;;  %v932_v30 = vrot.slane %v660_v13, 2  ;;  %v934_v31 = vrot.slane %v661_v14, 1  ;;  %v668_v33 = vld [vmem:[#allocation5 + $0x3d] sm:$0x1] }
  0x47   :  { %v358_v32 = vsel %vm315_vm6, %v357_v12, %v356_v27  ;;  %v925_v34 = vsel %vm300_vm1, %v924_v24, %v923_v21  ;;  %v936_v35 = vrot.slane %v663_v18, 7  ;;  %v938_v36 = vrot.slane %v664_v19, 6  ;;  %v73_v37 = vld [vmem:[#allocation5 + $0x42] sm:$0x1]  ;;  %v669_v39 = vld [vmem:[#allocation5 + $0x3f] sm:$0x1] }
  0x48   :  { %v1406_v38 = vpack.c.bf16 %v358_v32, %v344_v15  ;;  %v927_v40 = vsel %vm303_vm2, %v926_v25, %v925_v34  ;;  %v940_v41 = vrot.slane %v665_v20, 5  ;;  %v942_v42 = vrot.slane %v666_v23, 4  ;;  %v72_v43 = vld [vmem:[#allocation5 + $0x40] sm:$0x1]  ;;  %v74_v47 = vld [vmem:[#allocation5 + $0x44] sm:$0x1] }
  0x49   :  { %v929_v44 = vsel %vm306_vm3, %v928_v26, %v927_v40  ;;  %v937_v45 = vsel %vm297_vm0, %v936_v35, %v662_v17  ;;  %v944_v46 = vrot.slane %v667_v28, 3  ;;  %v75_v48 = vld [vmem:[#allocation5 + $0x46] sm:$0x1]  ;;  %v946_v51 = vrot.slane %v668_v33, 2  ;;  %v76_v52 = vld [vmem:[#allocation5 + $0x48] sm:$0x1] }
  0x4a   :  { %1408 = vmatpush3.bf16.xpose.msk.msra.mxu0 %vm1615_vm8, %v1406_v38  ;;  %v931_v49 = vsel %vm309_vm4, %v930_v29, %v929_v44  ;;  %v939_v50 = vsel %vm300_vm1, %v938_v36, %v937_v45  ;;  %v77_v53 = vld [vmem:[#allocation5 + $0x4a] sm:$0x1]  ;;  %v359_v54 = vrot.slane %v73_v37, 7  ;;  %v948_v57 = vrot.slane %v669_v39, 1  ;;  %v78_v58 = vld [vmem:[#allocation5 + $0x4c] sm:$0x1] }
  0x4b   :  { %v933_v55 = vsel %vm312_vm5, %v932_v30, %v931_v49  ;;  %v941_v56 = vsel %vm303_vm2, %v940_v41, %v939_v50  ;;  %1409 = vmatprep.subr.bf16.mxu0 %v1553_v0  ;;  %v79_v59 = vld [vmem:[#allocation5 + $0x4e] sm:$0x1]  ;;  %v80_v62 = vld [vmem:[#allocation5 + $0x50] sm:$0x1]  ;;  %v81_v1 = vld [vmem:[#allocation5 + $0x52] sm:$0x1] }
  0x4c   :  { %v935_v60 = vsel %vm315_vm6, %v934_v31, %v933_v55  ;;  %v943_v61 = vsel %vm306_vm3, %v942_v42, %v941_v56  ;;  %v82_v2 = vld [vmem:[#allocation5 + $0x54] sm:$0x1]  ;;  %v83_v3 = vld [vmem:[#allocation5 + $0x56] sm:$0x1]  ;;  %v360_v4 = vsel %vm297_vm0, %v359_v54, %v72_v43  ;;  %v84_v6 = vld [vmem:[#allocation5 + $0x58] sm:$0x1] }
  0x4d   :  { %v945_v5 = vsel %vm309_vm4, %v944_v46, %v943_v61  ;;  %v361_v7 = vrot.slane %v74_v47, 6  ;;  %v363_v8 = vrot.slane %v75_v48, 5  ;;  %v365_v9 = vrot.slane %v76_v52, 4  ;;  %v85_v11 = vld [vmem:[#allocation5 + $0x5a] sm:$0x1] }
  0x4e   :  { %v947_v10 = vsel %vm312_vm5, %v946_v51, %v945_v5  ;;  %v367_v12 = vrot.slane %v77_v53, 3  ;;  %v369_v13 = vrot.slane %v78_v58, 2  ;;  %v371_v14 = vrot.slane %v79_v59, 1  ;;  %v86_v16 = vld [vmem:[#allocation5 + $0x5c] sm:$0x1] }
  0x4f   :  { %v949_v15 = vsel %vm315_vm6, %v948_v57, %v947_v10  ;;  %v362_v17 = vsel %vm300_vm1, %v361_v7, %v360_v4  ;;  %v373_v18 = vrot.slane %v81_v1, 7  ;;  %v375_v19 = vrot.slane %v82_v2, 6  ;;  %v671_v20 = vld [vmem:[#allocation5 + $0x43] sm:$0x1]  ;;  %v87_v22 = vld [vmem:[#allocation5 + $0x5e] sm:$0x1] }
  0x50   :  { %v1438_v21 = vpack.c.bf16 %v949_v15, %v935_v60  ;;  %v364_v23 = vsel %vm303_vm2, %v363_v8, %v362_v17  ;;  %v377_v24 = vrot.slane %v83_v3, 5  ;;  %v379_v25 = vrot.slane %v84_v6, 4  ;;  %v670_v26 = vld [vmem:[#allocation5 + $0x41] sm:$0x1]  ;;  %v672_v30 = vld [vmem:[#allocation5 + $0x45] sm:$0x1] }
  0x51   :  { %v366_v27 = vsel %vm306_vm3, %v365_v9, %v364_v23  ;;  %v374_v28 = vsel %vm297_vm0, %v373_v18, %v80_v62  ;;  %v381_v29 = vrot.slane %v85_v11, 3  ;;  %v673_v31 = vld [vmem:[#allocation5 + $0x47] sm:$0x1]  ;;  %v383_v34 = vrot.slane %v86_v16, 2  ;;  %v674_v35 = vld [vmem:[#allocation5 + $0x49] sm:$0x1] }
  0x52   :  { %1440 = vmatpush3.bf16.xpose.msk.msra.mxu1 %vm1615_vm8, %v1438_v21  ;;  %v368_v32 = vsel %vm309_vm4, %v367_v12, %v366_v27  ;;  %v376_v33 = vsel %vm300_vm1, %v375_v19, %v374_v28  ;;  %v675_v36 = vld [vmem:[#allocation5 + $0x4b] sm:$0x1]  ;;  %v950_v37 = vrot.slane %v671_v20, 7  ;;  %v385_v40 = vrot.slane %v87_v22, 1  ;;  %v676_v41 = vld [vmem:[#allocation5 + $0x4d] sm:$0x1] }
  0x53   :  { %1441 = vmatprep.subr.bf16.mxu1 %v1553_v0  ;;  %v370_v38 = vsel %vm312_vm5, %v369_v13, %v368_v32  ;;  %v378_v39 = vsel %vm303_vm2, %v377_v24, %v376_v33  ;;  %v677_v42 = vld [vmem:[#allocation5 + $0x4f] sm:$0x1]  ;;  %v678_v45 = vld [vmem:[#allocation5 + $0x51] sm:$0x1]  ;;  %v679_v46 = vld [vmem:[#allocation5 + $0x53] sm:$0x1] }
  0x54   :  { %v372_v43 = vsel %vm315_vm6, %v371_v14, %v370_v38  ;;  %v380_v44 = vsel %vm306_vm3, %v379_v25, %v378_v39  ;;  %v680_v47 = vld [vmem:[#allocation5 + $0x55] sm:$0x1]  ;;  %v681_v48 = vld [vmem:[#allocation5 + $0x57] sm:$0x1]  ;;  %v951_v49 = vsel %vm297_vm0, %v950_v37, %v670_v26  ;;  %v682_v51 = vld [vmem:[#allocation5 + $0x59] sm:$0x1] }
  0x55   :  { %v382_v50 = vsel %vm309_vm4, %v381_v29, %v380_v44  ;;  %v952_v52 = vrot.slane %v672_v30, 6  ;;  %v954_v53 = vrot.slane %v673_v31, 5  ;;  %v956_v54 = vrot.slane %v674_v35, 4  ;;  %v683_v56 = vld [vmem:[#allocation5 + $0x5b] sm:$0x1] }
  0x56   :  { %v384_v55 = vsel %vm312_vm5, %v383_v34, %v382_v50  ;;  %v958_v57 = vrot.slane %v675_v36, 3  ;;  %v960_v58 = vrot.slane %v676_v41, 2  ;;  %v962_v59 = vrot.slane %v677_v42, 1  ;;  %v684_v61 = vld [vmem:[#allocation5 + $0x5d] sm:$0x1] }
  0x57   :  { %v386_v60 = vsel %vm315_vm6, %v385_v40, %v384_v55  ;;  %v953_v62 = vsel %vm300_vm1, %v952_v52, %v951_v49  ;;  %v964_v1 = vrot.slane %v679_v46, 7  ;;  %v966_v2 = vrot.slane %v680_v47, 6  ;;  %v89_v3 = vld [vmem:[#allocation5 + $0x62] sm:$0x1]  ;;  %v685_v5 = vld [vmem:[#allocation5 + $0x5f] sm:$0x1] }
  0x58   :  { %v1410_v4 = vpack.c.bf16 %v386_v60, %v372_v43  ;;  %v955_v6 = vsel %vm303_vm2, %v954_v53, %v953_v62  ;;  %v968_v7 = vrot.slane %v681_v48, 5  ;;  %v970_v8 = vrot.slane %v682_v51, 4  ;;  %v88_v9 = vld [vmem:[#allocation5 + $0x60] sm:$0x1]  ;;  %v90_v13 = vld [vmem:[#allocation5 + $0x64] sm:$0x1] }
  0x59   :  { %v957_v10 = vsel %vm306_vm3, %v956_v54, %v955_v6  ;;  %v965_v11 = vsel %vm297_vm0, %v964_v1, %v678_v45  ;;  %v972_v12 = vrot.slane %v683_v56, 3  ;;  %v91_v14 = vld [vmem:[#allocation5 + $0x66] sm:$0x1]  ;;  %v974_v17 = vrot.slane %v684_v61, 2  ;;  %v92_v18 = vld [vmem:[#allocation5 + $0x68] sm:$0x1] }
  0x5a   :  { %1412 = vmatpush3.bf16.xpose.msk.msra.mxu0 %vm1615_vm8, %v1410_v4  ;;  %v959_v15 = vsel %vm309_vm4, %v958_v57, %v957_v10  ;;  %v967_v16 = vsel %vm300_vm1, %v966_v2, %v965_v11  ;;  %v93_v19 = vld [vmem:[#allocation5 + $0x6a] sm:$0x1]  ;;  %v387_v20 = vrot.slane %v89_v3, 7  ;;  %v976_v23 = vrot.slane %v685_v5, 1  ;;  %v94_v24 = vld [vmem:[#allocation5 + $0x6c] sm:$0x1] }
  0x5b   :  { %v961_v21 = vsel %vm312_vm5, %v960_v58, %v959_v15  ;;  %v969_v22 = vsel %vm303_vm2, %v968_v7, %v967_v16  ;;  %1413 = vmatprep.subr.bf16.mxu0 %v1553_v0  ;;  %v95_v25 = vld [vmem:[#allocation5 + $0x6e] sm:$0x1]  ;;  %v96_v28 = vld [vmem:[#allocation5 + $0x70] sm:$0x1]  ;;  %v97_v29 = vld [vmem:[#allocation5 + $0x72] sm:$0x1] }
  0x5c   :  { %v963_v26 = vsel %vm315_vm6, %v962_v59, %v961_v21  ;;  %v971_v27 = vsel %vm306_vm3, %v970_v8, %v969_v22  ;;  %v98_v30 = vld [vmem:[#allocation5 + $0x74] sm:$0x1]  ;;  %v99_v31 = vld [vmem:[#allocation5 + $0x76] sm:$0x1]  ;;  %v388_v32 = vsel %vm297_vm0, %v387_v20, %v88_v9  ;;  %v100_v34 = vld [vmem:[#allocation5 + $0x78] sm:$0x1] }
  0x5d   :  { %v973_v33 = vsel %vm309_vm4, %v972_v12, %v971_v27  ;;  %v389_v35 = vrot.slane %v90_v13, 6  ;;  %v391_v36 = vrot.slane %v91_v14, 5  ;;  %v393_v37 = vrot.slane %v92_v18, 4  ;;  %v101_v39 = vld [vmem:[#allocation5 + $0x7a] sm:$0x1] }
  0x5e   :  { %v975_v38 = vsel %vm312_vm5, %v974_v17, %v973_v33  ;;  %v395_v40 = vrot.slane %v93_v19, 3  ;;  %v397_v41 = vrot.slane %v94_v24, 2  ;;  %v399_v42 = vrot.slane %v95_v25, 1  ;;  %v102_v44 = vld [vmem:[#allocation5 + $0x7c] sm:$0x1] }
  0x5f   :  { %v977_v43 = vsel %vm315_vm6, %v976_v23, %v975_v38  ;;  %v390_v45 = vsel %vm300_vm1, %v389_v35, %v388_v32  ;;  %v401_v46 = vrot.slane %v97_v29, 7  ;;  %v403_v47 = vrot.slane %v98_v30, 6  ;;  %v687_v48 = vld [vmem:[#allocation5 + $0x63] sm:$0x1]  ;;  %v103_v50 = vld [vmem:[#allocation5 + $0x7e] sm:$0x1] }
  0x60   :  { %v1442_v49 = vpack.c.bf16 %v977_v43, %v963_v26  ;;  %v392_v51 = vsel %vm303_vm2, %v391_v36, %v390_v45  ;;  %v405_v52 = vrot.slane %v99_v31, 5  ;;  %v407_v53 = vrot.slane %v100_v34, 4  ;;  %v686_v54 = vld [vmem:[#allocation5 + $0x61] sm:$0x1]  ;;  %v688_v58 = vld [vmem:[#allocation5 + $0x65] sm:$0x1] }
  0x61   :  { %v394_v55 = vsel %vm306_vm3, %v393_v37, %v392_v51  ;;  %v402_v56 = vsel %vm297_vm0, %v401_v46, %v96_v28  ;;  %v409_v57 = vrot.slane %v101_v39, 3  ;;  %v689_v59 = vld [vmem:[#allocation5 + $0x67] sm:$0x1]  ;;  %v411_v62 = vrot.slane %v102_v44, 2  ;;  %v690_v1 = vld [vmem:[#allocation5 + $0x69] sm:$0x1] }
  0x62   :  { %1444 = vmatpush3.bf16.xpose.msk.msra.mxu1 %vm1615_vm8, %v1442_v49  ;;  %v396_v60 = vsel %vm309_vm4, %v395_v40, %v394_v55  ;;  %v404_v61 = vsel %vm300_vm1, %v403_v47, %v402_v56  ;;  %v691_v2 = vld [vmem:[#allocation5 + $0x6b] sm:$0x1]  ;;  %v978_v3 = vrot.slane %v687_v48, 7  ;;  %v413_v6 = vrot.slane %v103_v50, 1  ;;  %v692_v7 = vld [vmem:[#allocation5 + $0x6d] sm:$0x1] }
  0x63   :  { %1445 = vmatprep.subr.bf16.mxu1 %v1553_v0  ;;  %v398_v4 = vsel %vm312_vm5, %v397_v41, %v396_v60  ;;  %v406_v5 = vsel %vm303_vm2, %v405_v52, %v404_v61  ;;  %v693_v8 = vld [vmem:[#allocation5 + $0x6f] sm:$0x1]  ;;  %v694_v11 = vld [vmem:[#allocation5 + $0x71] sm:$0x1]  ;;  %v695_v12 = vld [vmem:[#allocation5 + $0x73] sm:$0x1] }
  0x64   :  { %v400_v9 = vsel %vm315_vm6, %v399_v42, %v398_v4  ;;  %v408_v10 = vsel %vm306_vm3, %v407_v53, %v406_v5  ;;  %v696_v13 = vld [vmem:[#allocation5 + $0x75] sm:$0x1]  ;;  %v697_v14 = vld [vmem:[#allocation5 + $0x77] sm:$0x1]  ;;  %v979_v15 = vsel %vm297_vm0, %v978_v3, %v686_v54  ;;  %v698_v17 = vld [vmem:[#allocation5 + $0x79] sm:$0x1] }
  0x65   :  { %v410_v16 = vsel %vm309_vm4, %v409_v57, %v408_v10  ;;  %v980_v18 = vrot.slane %v688_v58, 6  ;;  %v982_v19 = vrot.slane %v689_v59, 5  ;;  %v984_v20 = vrot.slane %v690_v1, 4  ;;  %v699_v22 = vld [vmem:[#allocation5 + $0x7b] sm:$0x1] }
  0x66   :  { %v412_v21 = vsel %vm312_vm5, %v411_v62, %v410_v16  ;;  %v986_v23 = vrot.slane %v691_v2, 3  ;;  %v988_v24 = vrot.slane %v692_v7, 2  ;;  %v990_v25 = vrot.slane %v693_v8, 1  ;;  %v700_v27 = vld [vmem:[#allocation5 + $0x7d] sm:$0x1] }
  0x67   :  { %v414_v26 = vsel %vm315_vm6, %v413_v6, %v412_v21  ;;  %v981_v28 = vsel %vm300_vm1, %v980_v18, %v979_v15  ;;  %v992_v29 = vrot.slane %v695_v12, 7  ;;  %v994_v30 = vrot.slane %v696_v13, 6  ;;  %v105_v31 = vld [vmem:[#allocation5 + $0x82] sm:$0x1]  ;;  %v701_v33 = vld [vmem:[#allocation5 + $0x7f] sm:$0x1] }
  0x68   :  { %v1414_v32 = vpack.c.bf16 %v414_v26, %v400_v9  ;;  %v983_v34 = vsel %vm303_vm2, %v982_v19, %v981_v28  ;;  %v996_v35 = vrot.slane %v697_v14, 5  ;;  %v998_v36 = vrot.slane %v698_v17, 4  ;;  %v104_v37 = vld [vmem:[#allocation5 + $0x80] sm:$0x1]  ;;  %v106_v41 = vld [vmem:[#allocation5 + $0x84] sm:$0x1] }
  0x69   :  { %v985_v38 = vsel %vm306_vm3, %v984_v20, %v983_v34  ;;  %v993_v39 = vsel %vm297_vm0, %v992_v29, %v694_v11  ;;  %v1000_v40 = vrot.slane %v699_v22, 3  ;;  %v107_v42 = vld [vmem:[#allocation5 + $0x86] sm:$0x1]  ;;  %v1002_v45 = vrot.slane %v700_v27, 2  ;;  %v108_v46 = vld [vmem:[#allocation5 + $0x88] sm:$0x1] }
  0x6a   :  { %1416 = vmatpush3.bf16.xpose.msk.msra.mxu0 %vm1615_vm8, %v1414_v32  ;;  %v987_v43 = vsel %vm309_vm4, %v986_v23, %v985_v38  ;;  %v995_v44 = vsel %vm300_vm1, %v994_v30, %v993_v39  ;;  %v109_v47 = vld [vmem:[#allocation5 + $0x8a] sm:$0x1]  ;;  %v415_v48 = vrot.slane %v105_v31, 7  ;;  %v1004_v51 = vrot.slane %v701_v33, 1  ;;  %v110_v52 = vld [vmem:[#allocation5 + $0x8c] sm:$0x1] }
  0x6b   :  { %v989_v49 = vsel %vm312_vm5, %v988_v24, %v987_v43  ;;  %v997_v50 = vsel %vm303_vm2, %v996_v35, %v995_v44  ;;  %1417 = vmatprep.subr.bf16.mxu0 %v1553_v0  ;;  %v111_v53 = vld [vmem:[#allocation5 + $0x8e] sm:$0x1]  ;;  %v112_v56 = vld [vmem:[#allocation5 + $0x90] sm:$0x1]  ;;  %v113_v57 = vld [vmem:[#allocation5 + $0x92] sm:$0x1] }
  0x6c   :  { %v991_v54 = vsel %vm315_vm6, %v990_v25, %v989_v49  ;;  %v999_v55 = vsel %vm306_vm3, %v998_v36, %v997_v50  ;;  %v114_v58 = vld [vmem:[#allocation5 + $0x94] sm:$0x1]  ;;  %v115_v59 = vld [vmem:[#allocation5 + $0x96] sm:$0x1]  ;;  %v416_v60 = vsel %vm297_vm0, %v415_v48, %v104_v37  ;;  %v116_v62 = vld [vmem:[#allocation5 + $0x98] sm:$0x1] }
  0x6d   :  { %v1001_v61 = vsel %vm309_vm4, %v1000_v40, %v999_v55  ;;  %v417_v1 = vrot.slane %v106_v41, 6  ;;  %v419_v2 = vrot.slane %v107_v42, 5  ;;  %v421_v3 = vrot.slane %v108_v46, 4  ;;  %v117_v5 = vld [vmem:[#allocation5 + $0x9a] sm:$0x1] }
  0x6e   :  { %v1003_v4 = vsel %vm312_vm5, %v1002_v45, %v1001_v61  ;;  %v423_v6 = vrot.slane %v109_v47, 3  ;;  %v425_v7 = vrot.slane %v110_v52, 2  ;;  %v427_v8 = vrot.slane %v111_v53, 1  ;;  %v118_v10 = vld [vmem:[#allocation5 + $0x9c] sm:$0x1] }
  0x6f   :  { %v1005_v9 = vsel %vm315_vm6, %v1004_v51, %v1003_v4  ;;  %v418_v11 = vsel %vm300_vm1, %v417_v1, %v416_v60  ;;  %v429_v12 = vrot.slane %v113_v57, 7  ;;  %v431_v13 = vrot.slane %v114_v58, 6  ;;  %v703_v14 = vld [vmem:[#allocation5 + $0x83] sm:$0x1]  ;;  %v119_v16 = vld [vmem:[#allocation5 + $0x9e] sm:$0x1] }
  0x70   :  { %v1446_v15 = vpack.c.bf16 %v1005_v9, %v991_v54  ;;  %v420_v17 = vsel %vm303_vm2, %v419_v2, %v418_v11  ;;  %v433_v18 = vrot.slane %v115_v59, 5  ;;  %v435_v19 = vrot.slane %v116_v62, 4  ;;  %v702_v20 = vld [vmem:[#allocation5 + $0x81] sm:$0x1]  ;;  %v704_v24 = vld [vmem:[#allocation5 + $0x85] sm:$0x1] }
  0x71   :  { %v422_v21 = vsel %vm306_vm3, %v421_v3, %v420_v17  ;;  %v430_v22 = vsel %vm297_vm0, %v429_v12, %v112_v56  ;;  %v437_v23 = vrot.slane %v117_v5, 3  ;;  %v705_v25 = vld [vmem:[#allocation5 + $0x87] sm:$0x1]  ;;  %v439_v28 = vrot.slane %v118_v10, 2  ;;  %v706_v29 = vld [vmem:[#allocation5 + $0x89] sm:$0x1] }
  0x72   :  { %1448 = vmatpush3.bf16.xpose.msk.msra.mxu1 %vm1615_vm8, %v1446_v15  ;;  %v424_v26 = vsel %vm309_vm4, %v423_v6, %v422_v21  ;;  %v432_v27 = vsel %vm300_vm1, %v431_v13, %v430_v22  ;;  %v707_v30 = vld [vmem:[#allocation5 + $0x8b] sm:$0x1]  ;;  %v1006_v31 = vrot.slane %v703_v14, 7  ;;  %v441_v34 = vrot.slane %v119_v16, 1  ;;  %v708_v35 = vld [vmem:[#allocation5 + $0x8d] sm:$0x1] }
  0x73   :  { %1449 = vmatprep.subr.bf16.mxu1 %v1553_v0  ;;  %v426_v32 = vsel %vm312_vm5, %v425_v7, %v424_v26  ;;  %v434_v33 = vsel %vm303_vm2, %v433_v18, %v432_v27  ;;  %v709_v36 = vld [vmem:[#allocation5 + $0x8f] sm:$0x1]  ;;  %v710_v39 = vld [vmem:[#allocation5 + $0x91] sm:$0x1]  ;;  %v711_v40 = vld [vmem:[#allocation5 + $0x93] sm:$0x1] }
  0x74   :  { %v428_v37 = vsel %vm315_vm6, %v427_v8, %v426_v32  ;;  %v436_v38 = vsel %vm306_vm3, %v435_v19, %v434_v33  ;;  %v712_v41 = vld [vmem:[#allocation5 + $0x95] sm:$0x1]  ;;  %v713_v42 = vld [vmem:[#allocation5 + $0x97] sm:$0x1]  ;;  %v1007_v43 = vsel %vm297_vm0, %v1006_v31, %v702_v20  ;;  %v714_v45 = vld [vmem:[#allocation5 + $0x99] sm:$0x1] }
  0x75   :  { %v438_v44 = vsel %vm309_vm4, %v437_v23, %v436_v38  ;;  %v1008_v46 = vrot.slane %v704_v24, 6  ;;  %v1010_v47 = vrot.slane %v705_v25, 5  ;;  %v1012_v48 = vrot.slane %v706_v29, 4  ;;  %v715_v50 = vld [vmem:[#allocation5 + $0x9b] sm:$0x1] }
  0x76   :  { %v440_v49 = vsel %vm312_vm5, %v439_v28, %v438_v44  ;;  %v1014_v51 = vrot.slane %v707_v30, 3  ;;  %v1016_v52 = vrot.slane %v708_v35, 2  ;;  %v1018_v53 = vrot.slane %v709_v36, 1  ;;  %v716_v55 = vld [vmem:[#allocation5 + $0x9d] sm:$0x1] }
  0x77   :  { %v442_v54 = vsel %vm315_vm6, %v441_v34, %v440_v49  ;;  %v1009_v56 = vsel %vm300_vm1, %v1008_v46, %v1007_v43  ;;  %v1020_v57 = vrot.slane %v711_v40, 7  ;;  %v1022_v58 = vrot.slane %v712_v41, 6  ;;  %v121_v59 = vld [vmem:[#allocation5 + $0xa2] sm:$0x1]  ;;  %v717_v61 = vld [vmem:[#allocation5 + $0x9f] sm:$0x1] }
  0x78   :  { %v1418_v60 = vpack.c.bf16 %v442_v54, %v428_v37  ;;  %v1011_v62 = vsel %vm303_vm2, %v1010_v47, %v1009_v56  ;;  %v1024_v1 = vrot.slane %v713_v42, 5  ;;  %v1026_v2 = vrot.slane %v714_v45, 4  ;;  %v120_v3 = vld [vmem:[#allocation5 + $0xa0] sm:$0x1]  ;;  %v122_v7 = vld [vmem:[#allocation5 + $0xa4] sm:$0x1] }
  0x79   :  { %v1013_v4 = vsel %vm306_vm3, %v1012_v48, %v1011_v62  ;;  %v1021_v5 = vsel %vm297_vm0, %v1020_v57, %v710_v39  ;;  %v1028_v6 = vrot.slane %v715_v50, 3  ;;  %v123_v8 = vld [vmem:[#allocation5 + $0xa6] sm:$0x1]  ;;  %v1030_v11 = vrot.slane %v716_v55, 2  ;;  %v124_v12 = vld [vmem:[#allocation5 + $0xa8] sm:$0x1] }
  0x7a   :  { %1420 = vmatpush3.bf16.xpose.msk.msra.mxu0 %vm1615_vm8, %v1418_v60  ;;  %v1015_v9 = vsel %vm309_vm4, %v1014_v51, %v1013_v4  ;;  %v1023_v10 = vsel %vm300_vm1, %v1022_v58, %v1021_v5  ;;  %v125_v13 = vld [vmem:[#allocation5 + $0xaa] sm:$0x1]  ;;  %v443_v14 = vrot.slane %v121_v59, 7  ;;  %v1032_v17 = vrot.slane %v717_v61, 1  ;;  %v126_v18 = vld [vmem:[#allocation5 + $0xac] sm:$0x1] }
  0x7b   :  { %v1017_v15 = vsel %vm312_vm5, %v1016_v52, %v1015_v9  ;;  %v1025_v16 = vsel %vm303_vm2, %v1024_v1, %v1023_v10  ;;  %1421 = vmatprep.subr.bf16.mxu0 %v1553_v0  ;;  %v127_v19 = vld [vmem:[#allocation5 + $0xae] sm:$0x1]  ;;  %v128_v22 = vld [vmem:[#allocation5 + $0xb0] sm:$0x1]  ;;  %v129_v23 = vld [vmem:[#allocation5 + $0xb2] sm:$0x1] }
  0x7c   :  { %v1019_v20 = vsel %vm315_vm6, %v1018_v53, %v1017_v15  ;;  %v1027_v21 = vsel %vm306_vm3, %v1026_v2, %v1025_v16  ;;  %v130_v24 = vld [vmem:[#allocation5 + $0xb4] sm:$0x1]  ;;  %v131_v25 = vld [vmem:[#allocation5 + $0xb6] sm:$0x1]  ;;  %v444_v26 = vsel %vm297_vm0, %v443_v14, %v120_v3  ;;  %v132_v28 = vld [vmem:[#allocation5 + $0xb8] sm:$0x1] }
  0x7d   :  { %v1029_v27 = vsel %vm309_vm4, %v1028_v6, %v1027_v21  ;;  %v445_v29 = vrot.slane %v122_v7, 6  ;;  %v447_v30 = vrot.slane %v123_v8, 5  ;;  %v449_v31 = vrot.slane %v124_v12, 4  ;;  %v133_v33 = vld [vmem:[#allocation5 + $0xba] sm:$0x1] }
  0x7e   :  { %v1031_v32 = vsel %vm312_vm5, %v1030_v11, %v1029_v27  ;;  %v451_v34 = vrot.slane %v125_v13, 3  ;;  %v453_v35 = vrot.slane %v126_v18, 2  ;;  %v455_v36 = vrot.slane %v127_v19, 1  ;;  %v134_v38 = vld [vmem:[#allocation5 + $0xbc] sm:$0x1] }
  0x7f   :  { %v1033_v37 = vsel %vm315_vm6, %v1032_v17, %v1031_v32  ;;  %v446_v39 = vsel %vm300_vm1, %v445_v29, %v444_v26  ;;  %v457_v40 = vrot.slane %v129_v23, 7  ;;  %v459_v41 = vrot.slane %v130_v24, 6  ;;  %v719_v42 = vld [vmem:[#allocation5 + $0xa3] sm:$0x1]  ;;  %v135_v44 = vld [vmem:[#allocation5 + $0xbe] sm:$0x1] }
  0x80   :  { %v1450_v43 = vpack.c.bf16 %v1033_v37, %v1019_v20  ;;  %v448_v45 = vsel %vm303_vm2, %v447_v30, %v446_v39  ;;  %v461_v46 = vrot.slane %v131_v25, 5  ;;  %v463_v47 = vrot.slane %v132_v28, 4  ;;  %v718_v48 = vld [vmem:[#allocation5 + $0xa1] sm:$0x1]  ;;  %v720_v52 = vld [vmem:[#allocation5 + $0xa5] sm:$0x1] }
  0x81   :  { %v450_v49 = vsel %vm306_vm3, %v449_v31, %v448_v45  ;;  %v458_v50 = vsel %vm297_vm0, %v457_v40, %v128_v22  ;;  %v465_v51 = vrot.slane %v133_v33, 3  ;;  %v721_v53 = vld [vmem:[#allocation5 + $0xa7] sm:$0x1]  ;;  %v467_v56 = vrot.slane %v134_v38, 2  ;;  %v722_v57 = vld [vmem:[#allocation5 + $0xa9] sm:$0x1] }
  0x82   :  { %1452 = vmatpush3.bf16.xpose.msk.msra.mxu1 %vm1615_vm8, %v1450_v43  ;;  %v452_v54 = vsel %vm309_vm4, %v451_v34, %v450_v49  ;;  %v460_v55 = vsel %vm300_vm1, %v459_v41, %v458_v50  ;;  %v723_v58 = vld [vmem:[#allocation5 + $0xab] sm:$0x1]  ;;  %v1034_v59 = vrot.slane %v719_v42, 7  ;;  %v469_v62 = vrot.slane %v135_v44, 1  ;;  %v724_v1 = vld [vmem:[#allocation5 + $0xad] sm:$0x1] }
  0x83   :  { %1453 = vmatprep.subr.bf16.mxu1 %v1553_v0  ;;  %v454_v60 = vsel %vm312_vm5, %v453_v35, %v452_v54  ;;  %v462_v61 = vsel %vm303_vm2, %v461_v46, %v460_v55  ;;  %v725_v2 = vld [vmem:[#allocation5 + $0xaf] sm:$0x1]  ;;  %v726_v5 = vld [vmem:[#allocation5 + $0xb1] sm:$0x1]  ;;  %v727_v6 = vld [vmem:[#allocation5 + $0xb3] sm:$0x1] }
  0x84   :  { %v456_v3 = vsel %vm315_vm6, %v455_v36, %v454_v60  ;;  %v464_v4 = vsel %vm306_vm3, %v463_v47, %v462_v61  ;;  %v728_v7 = vld [vmem:[#allocation5 + $0xb5] sm:$0x1]  ;;  %v729_v8 = vld [vmem:[#allocation5 + $0xb7] sm:$0x1]  ;;  %v1035_v9 = vsel %vm297_vm0, %v1034_v59, %v718_v48  ;;  %v730_v11 = vld [vmem:[#allocation5 + $0xb9] sm:$0x1] }
  0x85   :  { %v466_v10 = vsel %vm309_vm4, %v465_v51, %v464_v4  ;;  %v1036_v12 = vrot.slane %v720_v52, 6  ;;  %v1038_v13 = vrot.slane %v721_v53, 5  ;;  %v1040_v14 = vrot.slane %v722_v57, 4  ;;  %v731_v16 = vld [vmem:[#allocation5 + $0xbb] sm:$0x1] }
  0x86   :  { %v468_v15 = vsel %vm312_vm5, %v467_v56, %v466_v10  ;;  %v1042_v17 = vrot.slane %v723_v58, 3  ;;  %v1044_v18 = vrot.slane %v724_v1, 2  ;;  %v1046_v19 = vrot.slane %v725_v2, 1  ;;  %v732_v21 = vld [vmem:[#allocation5 + $0xbd] sm:$0x1] }
  0x87   :  { %v470_v20 = vsel %vm315_vm6, %v469_v62, %v468_v15  ;;  %v1037_v22 = vsel %vm300_vm1, %v1036_v12, %v1035_v9  ;;  %v1048_v23 = vrot.slane %v727_v6, 7  ;;  %v1050_v24 = vrot.slane %v728_v7, 6  ;;  %v137_v25 = vld [vmem:[#allocation5 + $0xc2] sm:$0x1]  ;;  %v733_v27 = vld [vmem:[#allocation5 + $0xbf] sm:$0x1] }
  0x88   :  { %v1422_v26 = vpack.c.bf16 %v470_v20, %v456_v3  ;;  %v1039_v28 = vsel %vm303_vm2, %v1038_v13, %v1037_v22  ;;  %v1052_v29 = vrot.slane %v729_v8, 5  ;;  %v1054_v30 = vrot.slane %v730_v11, 4  ;;  %v136_v31 = vld [vmem:[#allocation5 + $0xc0] sm:$0x1]  ;;  %v138_v35 = vld [vmem:[#allocation5 + $0xc4] sm:$0x1] }
  0x89   :  { %v1041_v32 = vsel %vm306_vm3, %v1040_v14, %v1039_v28  ;;  %v1049_v33 = vsel %vm297_vm0, %v1048_v23, %v726_v5  ;;  %v1056_v34 = vrot.slane %v731_v16, 3  ;;  %v139_v36 = vld [vmem:[#allocation5 + $0xc6] sm:$0x1]  ;;  %v1058_v39 = vrot.slane %v732_v21, 2  ;;  %v140_v40 = vld [vmem:[#allocation5 + $0xc8] sm:$0x1] }
  0x8a   :  { %1424 = vmatpush3.bf16.xpose.msk.msra.mxu0 %vm1615_vm8, %v1422_v26  ;;  %v1043_v37 = vsel %vm309_vm4, %v1042_v17, %v1041_v32  ;;  %v1051_v38 = vsel %vm300_vm1, %v1050_v24, %v1049_v33  ;;  %v141_v41 = vld [vmem:[#allocation5 + $0xca] sm:$0x1]  ;;  %v471_v42 = vrot.slane %v137_v25, 7  ;;  %v1060_v45 = vrot.slane %v733_v27, 1  ;;  %v142_v46 = vld [vmem:[#allocation5 + $0xcc] sm:$0x1] }
  0x8b   :  { %v1045_v43 = vsel %vm312_vm5, %v1044_v18, %v1043_v37  ;;  %v1053_v44 = vsel %vm303_vm2, %v1052_v29, %v1051_v38  ;;  %1425 = vmatprep.subr.bf16.mxu0 %v1553_v0  ;;  %v143_v47 = vld [vmem:[#allocation5 + $0xce] sm:$0x1]  ;;  %v144_v50 = vld [vmem:[#allocation5 + $0xd0] sm:$0x1]  ;;  %v145_v51 = vld [vmem:[#allocation5 + $0xd2] sm:$0x1] }
  0x8c   :  { %v1047_v48 = vsel %vm315_vm6, %v1046_v19, %v1045_v43  ;;  %v1055_v49 = vsel %vm306_vm3, %v1054_v30, %v1053_v44  ;;  %v146_v52 = vld [vmem:[#allocation5 + $0xd4] sm:$0x1]  ;;  %v147_v53 = vld [vmem:[#allocation5 + $0xd6] sm:$0x1]  ;;  %v472_v54 = vsel %vm297_vm0, %v471_v42, %v136_v31  ;;  %v148_v56 = vld [vmem:[#allocation5 + $0xd8] sm:$0x1] }
  0x8d   :  { %v1057_v55 = vsel %vm309_vm4, %v1056_v34, %v1055_v49  ;;  %v473_v57 = vrot.slane %v138_v35, 6  ;;  %v475_v58 = vrot.slane %v139_v36, 5  ;;  %v477_v59 = vrot.slane %v140_v40, 4  ;;  %v149_v61 = vld [vmem:[#allocation5 + $0xda] sm:$0x1] }
  0x8e   :  { %v1059_v60 = vsel %vm312_vm5, %v1058_v39, %v1057_v55  ;;  %v479_v62 = vrot.slane %v141_v41, 3  ;;  %v481_v1 = vrot.slane %v142_v46, 2  ;;  %v483_v2 = vrot.slane %v143_v47, 1  ;;  %v150_v4 = vld [vmem:[#allocation5 + $0xdc] sm:$0x1] }
  0x8f   :  { %v1061_v3 = vsel %vm315_vm6, %v1060_v45, %v1059_v60  ;;  %v474_v5 = vsel %vm300_vm1, %v473_v57, %v472_v54  ;;  %v485_v6 = vrot.slane %v145_v51, 7  ;;  %v487_v7 = vrot.slane %v146_v52, 6  ;;  %v735_v8 = vld [vmem:[#allocation5 + $0xc3] sm:$0x1]  ;;  %v151_v10 = vld [vmem:[#allocation5 + $0xde] sm:$0x1] }
  0x90   :  { %v1454_v9 = vpack.c.bf16 %v1061_v3, %v1047_v48  ;;  %v476_v11 = vsel %vm303_vm2, %v475_v58, %v474_v5  ;;  %v489_v12 = vrot.slane %v147_v53, 5  ;;  %v491_v13 = vrot.slane %v148_v56, 4  ;;  %v734_v14 = vld [vmem:[#allocation5 + $0xc1] sm:$0x1]  ;;  %v736_v18 = vld [vmem:[#allocation5 + $0xc5] sm:$0x1] }
  0x91   :  { %v478_v15 = vsel %vm306_vm3, %v477_v59, %v476_v11  ;;  %v486_v16 = vsel %vm297_vm0, %v485_v6, %v144_v50  ;;  %v493_v17 = vrot.slane %v149_v61, 3  ;;  %v737_v19 = vld [vmem:[#allocation5 + $0xc7] sm:$0x1]  ;;  %v495_v22 = vrot.slane %v150_v4, 2  ;;  %v738_v23 = vld [vmem:[#allocation5 + $0xc9] sm:$0x1] }
  0x92   :  { %1456 = vmatpush3.bf16.xpose.msk.msra.mxu1 %vm1615_vm8, %v1454_v9  ;;  %v480_v20 = vsel %vm309_vm4, %v479_v62, %v478_v15  ;;  %v488_v21 = vsel %vm300_vm1, %v487_v7, %v486_v16  ;;  %v739_v24 = vld [vmem:[#allocation5 + $0xcb] sm:$0x1]  ;;  %v1062_v25 = vrot.slane %v735_v8, 7  ;;  %v497_v28 = vrot.slane %v151_v10, 1  ;;  %v740_v29 = vld [vmem:[#allocation5 + $0xcd] sm:$0x1] }
  0x93   :  { %1457 = vmatprep.subr.bf16.mxu1 %v1553_v0  ;;  %v482_v26 = vsel %vm312_vm5, %v481_v1, %v480_v20  ;;  %v490_v27 = vsel %vm303_vm2, %v489_v12, %v488_v21  ;;  %v741_v30 = vld [vmem:[#allocation5 + $0xcf] sm:$0x1]  ;;  %v742_v33 = vld [vmem:[#allocation5 + $0xd1] sm:$0x1]  ;;  %v743_v34 = vld [vmem:[#allocation5 + $0xd3] sm:$0x1] }
  0x94   :  { %v484_v31 = vsel %vm315_vm6, %v483_v2, %v482_v26  ;;  %v492_v32 = vsel %vm306_vm3, %v491_v13, %v490_v27  ;;  %v744_v35 = vld [vmem:[#allocation5 + $0xd5] sm:$0x1]  ;;  %v745_v36 = vld [vmem:[#allocation5 + $0xd7] sm:$0x1]  ;;  %v1063_v37 = vsel %vm297_vm0, %v1062_v25, %v734_v14  ;;  %v746_v39 = vld [vmem:[#allocation5 + $0xd9] sm:$0x1] }
  0x95   :  { %v494_v38 = vsel %vm309_vm4, %v493_v17, %v492_v32  ;;  %v1064_v40 = vrot.slane %v736_v18, 6  ;;  %v1066_v41 = vrot.slane %v737_v19, 5  ;;  %v1068_v42 = vrot.slane %v738_v23, 4  ;;  %v747_v44 = vld [vmem:[#allocation5 + $0xdb] sm:$0x1] }
  0x96   :  { %v496_v43 = vsel %vm312_vm5, %v495_v22, %v494_v38  ;;  %v1070_v45 = vrot.slane %v739_v24, 3  ;;  %v1072_v46 = vrot.slane %v740_v29, 2  ;;  %v1074_v47 = vrot.slane %v741_v30, 1  ;;  %v748_v49 = vld [vmem:[#allocation5 + $0xdd] sm:$0x1] }
  0x97   :  { %v498_v48 = vsel %vm315_vm6, %v497_v28, %v496_v43  ;;  %v1065_v50 = vsel %vm300_vm1, %v1064_v40, %v1063_v37  ;;  %v1076_v51 = vrot.slane %v743_v34, 7  ;;  %v1078_v52 = vrot.slane %v744_v35, 6  ;;  %v153_v53 = vld [vmem:[#allocation5 + $0xe2] sm:$0x1]  ;;  %v749_v55 = vld [vmem:[#allocation5 + $0xdf] sm:$0x1] }
  0x98   :  { %v1426_v54 = vpack.c.bf16 %v498_v48, %v484_v31  ;;  %v1067_v56 = vsel %vm303_vm2, %v1066_v41, %v1065_v50  ;;  %v1080_v57 = vrot.slane %v745_v36, 5  ;;  %v1082_v58 = vrot.slane %v746_v39, 4  ;;  %v152_v59 = vld [vmem:[#allocation5 + $0xe0] sm:$0x1]  ;;  %v154_v1 = vld [vmem:[#allocation5 + $0xe4] sm:$0x1] }
  0x99   :  { %v1069_v60 = vsel %vm306_vm3, %v1068_v42, %v1067_v56  ;;  %v1077_v61 = vsel %vm297_vm0, %v1076_v51, %v742_v33  ;;  %v1084_v62 = vrot.slane %v747_v44, 3  ;;  %v155_v2 = vld [vmem:[#allocation5 + $0xe6] sm:$0x1]  ;;  %v1086_v5 = vrot.slane %v748_v49, 2  ;;  %v156_v6 = vld [vmem:[#allocation5 + $0xe8] sm:$0x1] }
  0x9a   :  { %1428 = vmatpush3.bf16.xpose.msk.msra.mxu0 %vm1615_vm8, %v1426_v54  ;;  %v1071_v3 = vsel %vm309_vm4, %v1070_v45, %v1069_v60  ;;  %v1079_v4 = vsel %vm300_vm1, %v1078_v52, %v1077_v61  ;;  %v157_v7 = vld [vmem:[#allocation5 + $0xea] sm:$0x1]  ;;  %v499_v8 = vrot.slane %v153_v53, 7  ;;  %v1088_v11 = vrot.slane %v749_v55, 1  ;;  %v158_v12 = vld [vmem:[#allocation5 + $0xec] sm:$0x1] }
  0x9b   :  { %v1073_v9 = vsel %vm312_vm5, %v1072_v46, %v1071_v3  ;;  %v1081_v10 = vsel %vm303_vm2, %v1080_v57, %v1079_v4  ;;  %1429 = vmatprep.subr.bf16.mxu0 %v1553_v0  ;;  %v159_v13 = vld [vmem:[#allocation5 + $0xee] sm:$0x1]  ;;  %v160_v16 = vld [vmem:[#allocation5 + $0xf0] sm:$0x1]  ;;  %v161_v17 = vld [vmem:[#allocation5 + $0xf2] sm:$0x1] }
  0x9c   :  { %v1075_v14 = vsel %vm315_vm6, %v1074_v47, %v1073_v9  ;;  %v1083_v15 = vsel %vm306_vm3, %v1082_v58, %v1081_v10  ;;  %v162_v18 = vld [vmem:[#allocation5 + $0xf4] sm:$0x1]  ;;  %v163_v19 = vld [vmem:[#allocation5 + $0xf6] sm:$0x1]  ;;  %v500_v20 = vsel %vm297_vm0, %v499_v8, %v152_v59  ;;  %v164_v22 = vld [vmem:[#allocation5 + $0xf8] sm:$0x1] }
  0x9d   :  { %v1085_v21 = vsel %vm309_vm4, %v1084_v62, %v1083_v15  ;;  %v501_v23 = vrot.slane %v154_v1, 6  ;;  %v503_v24 = vrot.slane %v155_v2, 5  ;;  %v505_v25 = vrot.slane %v156_v6, 4  ;;  %v165_v27 = vld [vmem:[#allocation5 + $0xfa] sm:$0x1] }
  0x9e   :  { %v1087_v26 = vsel %vm312_vm5, %v1086_v5, %v1085_v21  ;;  %v507_v28 = vrot.slane %v157_v7, 3  ;;  %v509_v29 = vrot.slane %v158_v12, 2  ;;  %v511_v30 = vrot.slane %v159_v13, 1  ;;  %v166_v32 = vld [vmem:[#allocation5 + $0xfc] sm:$0x1] }
  0x9f   :  { %v1089_v31 = vsel %vm315_vm6, %v1088_v11, %v1087_v26  ;;  %v502_v33 = vsel %vm300_vm1, %v501_v23, %v500_v20  ;;  %v513_v34 = vrot.slane %v161_v17, 7  ;;  %v515_v35 = vrot.slane %v162_v18, 6  ;;  %v751_v36 = vld [vmem:[#allocation5 + $0xe3] sm:$0x1]  ;;  %v167_v38 = vld [vmem:[#allocation5 + $0xfe] sm:$0x1] }
  0xa0   :  { %v1458_v37 = vpack.c.bf16 %v1089_v31, %v1075_v14  ;;  %v504_v39 = vsel %vm303_vm2, %v503_v24, %v502_v33  ;;  %v517_v40 = vrot.slane %v163_v19, 5  ;;  %v519_v41 = vrot.slane %v164_v22, 4  ;;  %v750_v45 = vld [vmem:[#allocation5 + $0xe1] sm:$0x1]  ;;  %v752_v46 = vld [vmem:[#allocation5 + $0xe5] sm:$0x1] }
  0xa1   :  { %v506_v42 = vsel %vm306_vm3, %v505_v25, %v504_v39  ;;  %v514_v43 = vsel %vm297_vm0, %v513_v34, %v160_v16  ;;  %v521_v44 = vrot.slane %v165_v27, 3  ;;  %v523_v49 = vrot.slane %v166_v32, 2  ;;  %v753_v50 = vld [vmem:[#allocation5 + $0xe7] sm:$0x1]  ;;  %v754_v51 = vld [vmem:[#allocation5 + $0xe9] sm:$0x1] }
  0xa2   :  { %1460 = vmatpush3.bf16.xpose.msk.msra.mxu1 %vm1615_vm8, %v1458_v37  ;;  %v508_v47 = vsel %vm309_vm4, %v507_v28, %v506_v42  ;;  %v516_v48 = vsel %vm300_vm1, %v515_v35, %v514_v43  ;;  %v1090_v52 = vrot.slane %v751_v36, 7  ;;  %v525_v55 = vrot.slane %v167_v38, 1  ;;  %v755_v56 = vld [vmem:[#allocation5 + $0xeb] sm:$0x1]  ;;  %v756_v57 = vld [vmem:[#allocation5 + $0xed] sm:$0x1] }
  0xa3   :  { %1461 = vmatprep.subr.bf16.mxu1 %v1553_v0  ;;  %v510_v53 = vsel %vm312_vm5, %v509_v29, %v508_v47  ;;  %v518_v54 = vsel %vm303_vm2, %v517_v40, %v516_v48  ;;  %v757_v60 = vld [vmem:[#allocation5 + $0xef] sm:$0x1]  ;;  %v759_v61 = vld [vmem:[#allocation5 + $0xf3] sm:$0x1]  ;;  %v760_v62 = vld [vmem:[#allocation5 + $0xf5] sm:$0x1]  ;;  %v1229_v43 = vlaneseq }
  0xa4   :  { %v512_v58 = vsel %vm315_vm6, %v511_v30, %v510_v53  ;;  %v520_v59 = vsel %vm306_vm3, %v519_v41, %v518_v54  ;;  %v761_v1 = vld [vmem:[#allocation5 + $0xf7] sm:$0x1]  ;;  %v1091_v2 = vsel %vm297_vm0, %v1090_v52, %v750_v45  ;;  %v762_v0 = vld [vmem:[#allocation5 + $0xf9] sm:$0x1]  ;;  %v1092_v4 = vrot.slane %v752_v46, 6 }
  0xa5   :  { %v522_v3 = vsel %vm309_vm4, %v521_v44, %v520_v59  ;;  %v1094_v5 = vrot.slane %v753_v50, 5  ;;  %v1096_v6 = vrot.slane %v754_v51, 4  ;;  %v758_v8 = vld [vmem:[#allocation5 + $0xf1] sm:$0x1]  ;;  %v763_v9 = vld [vmem:[#allocation5 + $0xfb] sm:$0x1] }
  0xa6   :  { %v524_v7 = vsel %vm312_vm5, %v523_v49, %v522_v3  ;;  %v1098_v10 = vrot.slane %v755_v56, 3  ;;  %v1100_v11 = vrot.slane %v756_v57, 2  ;;  %v764_v13 = vld [vmem:[#allocation5 + $0xfd] sm:$0x1]  ;;  %v1093_v14 = vsel %vm300_vm1, %v1092_v4, %v1091_v2  ;;  %v765_v18 = vld [vmem:[#allocation5 + $0xff] sm:$0x1] }
  0xa7   :  { %v526_v12 = vsel %vm315_vm6, %v525_v55, %v524_v7  ;;  %v1104_v15 = vrot.slane %v759_v61, 7  ;;  %v1106_v16 = vrot.slane %v760_v62, 6  ;;  %v1095_v19 = vsel %vm303_vm2, %v1094_v5, %v1093_v14  ;;  %v39_v37 = vld [vmem:[#allocation2] sm:$0x1]  ;;  %v637_v40 = vld [vmem:[#allocation2 + $0x1] sm:$0x1] }
  0xa8   :  { %v1430_v17 = vpack.c.bf16 %v526_v12, %v512_v58  ;;  %v1108_v20 = vrot.slane %v761_v1, 5  ;;  %v1110_v21 = vrot.slane %v762_v0, 4  ;;  %v1097_v22 = vsel %vm306_vm3, %v1096_v6, %v1095_v19 }
  0xa9   :  { %v1102_v23 = vrot.slane %v757_v60, 1  ;;  %v1105_v24 = vsel %vm297_vm0, %v1104_v15, %v758_v8  ;;  %v1112_v25 = vrot.slane %v763_v9, 3  ;;  %v1099_v26 = vsel %vm309_vm4, %v1098_v10, %v1097_v22 }
  0xaa   :  { %1432 = vmatpush3.bf16.xpose.msk.msra.mxu0 %vm1615_vm8, %v1430_v17  ;;  %v1107_v27 = vsel %vm300_vm1, %v1106_v16, %v1105_v24  ;;  %v1114_v28 = vrot.slane %v764_v13, 2  ;;  %v1101_v29 = vsel %vm312_vm5, %v1100_v11, %v1099_v26  ;;  %v1116_v31 = vrot.slane %v765_v18, 1 }
  0xab   :  { %v1109_v30 = vsel %vm303_vm2, %v1108_v20, %v1107_v27  ;;  %vm1554_vm9 = vmmov 0   ;;  %v1555_v33 = vmov 0.0   ;;  %v1103_v34 = vsel %vm315_vm6, %v1102_v23, %v1101_v29 }
  0xac   :  { %v1111_v32 = vsel %vm306_vm3, %v1110_v21, %v1109_v30  ;;  %1363 = vmatprep.mubr.msk.f32.mxu0 %vm1554_vm9, %v1555_v33  ;;  %1398 = vmatprep.mubr.msk.f32.mxu1 %vm1554_vm9, %v1555_v33  ;;  %v1230_v46 = vand.u32 127, %v1229_v43  ;;  %vm1233_vm11 = vcmask 1041408  }
  0xad   :  { %v1113_v35 = vsel %vm309_vm4, %v1112_v25, %v1111_v32 }
  0xae   :  { %v1115_v36 = vsel %vm312_vm5, %v1114_v28, %v1113_v35  ;;  %vm1231_vm10 = vcmp.lt.s32.totalorder %v1230_v46, 8 }
  0xaf   :  { %v1117_v38 = vsel %vm315_vm6, %v1116_v31, %v1115_v36 }
  0xb0   :  { %v1462_v39 = vpack.c.bf16 %v1117_v38, %v1103_v34 }
  0xb1   :  { %1364 = vmatmul.mubr.msk.f32.vlgmr.msra.gmra.mrb[0].mxu0 %vm527_vm7, %v39_v37 }
  0xb2   :  { %1464 = vmatpush3.bf16.xpose.msk.msra.mxu1 %vm1615_vm8, %v1462_v39 }
  0xb9   :  { %1399 = vmatmul.mubr.msk.f32.vlgmr.msra.gmra.mrb[0].mxu1 %vm527_vm7, %v637_v40 }
 0x184   :  { %v629_v41 = vpop.f32.mrb[0].mxu0 }
 0x185   :  { %636 = vst [vmem:[#allocation7] sm:$0x1] %v629_v41  ;;  %v1365_v42 = vpop.f32.mrb[1].mxu0 }
 0x18c   :  { %v1219_v44 = vpop.f32.mrb[0].mxu1 }
 0x18d   :  { %1223 = vst [vmem:[#allocation7 + $0x1] sm:$0x1] %v1219_v44  ;;  %v1400_v45 = vpop.f32.mrb[1].mxu1 }
 0x194   :  { %v1228_v47 = vld [vmem:[#allocation7] sm:$0x3] }
 0x195   :  { %v1232_v48 = vsel %vm1231_vm10, %v1228_v47, -inf }
 0x196   :  { %v1234_v49 = vsel %vm1233_vm11, %v1232_v48, -inf }
 0x197   :  { %1235 = vmax.xlane.f32.xlu0 %v1234_v49 }
 0x224   :  { %v1236_v50 = vpop.xlane.xlu0 %1235 }
 0x225   :  { %v1237_v63 = vsub.f32 %v1232_v48, %v1236_v50 }
 0x227   :  { %v1238_v51 = vmul.f32 1.442695, %v1237_v63 }
 0x229   :  { %1473 = vpow2.f32 %v1238_v51 }
 0x233   :  { %v1474_v52 = vpop.eup %1473 }
 0x234   :  { %v1240_v53 = vsel %vm1233_vm11, %v1474_v52, 0.0 }
 0x235   :  { %1241 = vadd.xlane.f32.xlu0 %v1240_v53 }
 0x2c2   :  { %v1242_v54 = vpop.xlane.xlu0 %1241 }
 0x2c3   :  { %1475 = vrcp.f32 %v1242_v54 }
 0x2cd   :  { %v1476_v55 = vpop.eup %1475 }
 0x2ce   :  { %v1244_v56 = vmul.f32 %v1476_v55, %v1474_v52 }
 0x2d0   :  { %1245 = vst [vmem:[#allocation7] sm:$0x3] %v1244_v56 }
 0x2d1   :  { %1532 = shalt.err (!%p1529_p6)
}
 0x2d2   :  { %s1533_s11 = scalar_lea.hbm %s1890_s2, 32 }
 0x2d3   :  { %p1534_p7 = scmp.ne.s32.totalorder %s1890_s2, %s1533_s11  ;;  %p1537_p8 = scmp.lt.u32.totalorder %s1533_s11, %s1890_s2 }
 0x2d5   :  { %p1539_p9 = pnand %p1537_p8, %p1534_p7 }
 0x2d7   :  { %1542 = shalt.err (!%p1539_p9)
}
 0x2d8   :  { %1255 = dma.vmem_to_hbm [thread:$0]  %s1253_s7, 32, %s1890_s2, [#allocation4]  }
 0x2d9   :  { %1547 = dma.done.wait [#allocation4], 32  }
 0x2da   :  { %1548 = vsyncadd [#allocation4], 4294967264 }
 0x2db   :  { %1259 = vsyncpa [#allocation3], 1 }
 0x2dc   :  { %1260 = vsyncpa [#allocation6], 1 }
 0x2dd   :  { %1261 = vsyncpa [#allocation4], 1 }

</bundles_post_ra>
